<compile_context>
chip_gen: v6e
topology: v6e:2x2x1
jax: 0.10.0
libtpu: 0.0.40
codegen_flags: <defaults>
</compile_context>

<pallas_src>
import functools

import jax
import jax.numpy as jnp
from jax.experimental import pallas as pl
from jax.experimental.pallas import tpu as pltpu


def _round_up(x: int, m: int) -> int:
    return ((x + m - 1) // m) * m


def _ce_kernel(logits_ref, targets_ref, out_ref, *, n_valid: int):
    """One batch tile: per-row CE losses summed into a lane-dense partial."""
    tn, c = logits_ref.shape
    i = pl.program_id(0)

    logits = logits_ref[...].astype(jnp.float32)                   # (TN, C)
    tgt = targets_ref[...]                                          # (TN, 1) i32

    # Fused pass: shift by the row max once, reuse for exp-sum and the
    # one-hot target gather.  loss = lse - x[target]
    #          = log(sum(exp(x - m))) - (x[target] - m)   (m cancels).
    m = jnp.max(logits, axis=-1, keepdims=True)                     # (TN, 1)
    shifted = logits - m                                             # (TN, C)
    sum_exp = jnp.sum(jnp.exp(shifted), axis=-1, keepdims=True)      # (TN, 1)

    col = jax.lax.broadcasted_iota(jnp.int32, (tn, c), 1)            # (TN, C)
    tgt_shifted = jnp.sum(
        jnp.where(col == tgt, shifted, 0.0), axis=-1, keepdims=True)  # (TN, 1)

    per_example = jnp.log(sum_exp) - tgt_shifted                     # (TN, 1)

    # Mask rows that are padding (N rounded up to a multiple of TN).
    row = i * tn + jax.lax.broadcasted_iota(jnp.int32, (tn, 1), 0)
    per_example = jnp.where(row < n_valid, per_example, 0.0)

    tile_sum = jnp.sum(per_example)                                  # rank-0 f32
    # Lane-dense (1, 128) store: partial sum replicated across the 128 lanes.
    out_ref[...] = jnp.broadcast_to(tile_sum, out_ref.shape).astype(jnp.float32)


def cross_entropy_loss(outputs, targets, *, block_rows: int = 128):
    """outputs: (N, C) float logits; targets: (N,) int class indices.

    Scalar float32 loss, same semantics as torch.nn.CrossEntropyLoss()(outputs, targets).
    """
    n, c = outputs.shape

    # Row tile: multiple of 8 sublanes, capped at block_rows.
    tn = min(block_rows, _round_up(n, 8))
    n_pad = _round_up(n, tn)
    if n_pad != n:
        outputs = jnp.pad(outputs, ((0, n_pad - n), (0, 0)))
        targets = jnp.pad(targets, (0, n_pad - n))
    num_chunks = n_pad // tn

    targets_col = targets.astype(jnp.int32).reshape(n_pad, 1)

    itemsize = jnp.dtype(outputs.dtype).itemsize
    cost = pl.CostEstimate(
        flops=5 * n_pad * c,
        transcendentals=n_pad * c,
        bytes_accessed=n_pad * c * itemsize + n_pad * 4 + num_chunks * 128 * 4,
    )
    # Budget VMEM for double-buffered tiles (+ headroom); cap at v7x physical.
    vmem_budget = int(min(max(6 * tn * c * 4, 16 << 20), 64 << 20))

    out = pl.pallas_call(
        functools.partial(_ce_kernel, n_valid=n),
        out_shape=jax.ShapeDtypeStruct((1, 128 * num_chunks), jnp.float32),
        grid_spec=pltpu.PrefetchScalarGridSpec(
            num_scalar_prefetch=0,
            grid=(num_chunks,),
            in_specs=[
                pl.BlockSpec((tn, c), lambda i: (i, 0)),
                pl.BlockSpec((tn, 1), lambda i: (i, 0)),
            ],
            out_specs=pl.BlockSpec((1, 128), lambda i: (0, i)),
        ),
        compiler_params=pltpu.CompilerParams(
            dimension_semantics=("parallel",),
            vmem_limit_bytes=vmem_budget,
        ),
        cost_estimate=cost,
    )(outputs, targets_col)

    # Each chunk replicated its partial across 128 lanes; take lane 0 of each.
    partials = out[0].reshape(num_chunks, 128)[:, 0]
    return jnp.sum(partials) / jnp.float32(n)


if __name__ == "__main__":
    key = jax.random.PRNGKey(0)
    k1, k2, k3, k4 = jax.random.split(key, 4)

    # Case 1: small, single-chunk.
    N, C = 8, 32
    outputs = jax.random.normal(k1, (N, C), dtype=jnp.float32)
    targets = jax.random.randint(k2, (N,), 0, C, dtype=jnp.int32)
    loss = cross_entropy_loss(outputs, targets)
    jax.block_until_ready(loss)
    logp = jax.nn.log_softmax(outputs, axis=-1)
    ref = -jnp.mean(jnp.take_along_axis(logp, targets[:, None], axis=-1))
    assert jnp.allclose(loss, ref, atol=1e-5, rtol=1e-5), (loss, ref)

    # Case 2: ragged N (exercises multi-chunk pipeline + tail masking).
    N2, C2 = 37, 160
    outputs2 = jax.random.normal(k3, (N2, C2), dtype=jnp.float32)
    targets2 = jax.random.randint(k4, (N2,), 0, C2, dtype=jnp.int32)
    loss2 = cross_entropy_loss(outputs2, targets2, block_rows=16)
    jax.block_until_ready(loss2)
    logp2 = jax.nn.log_softmax(outputs2, axis=-1)
    ref2 = -jnp.mean(jnp.take_along_axis(logp2, targets2[:, None], axis=-1))
    assert jnp.allclose(loss2, ref2, atol=1e-5, rtol=1e-5), (loss2, ref2)

    print("KERNEL_OK")
</pallas_src>

<mosaic_0001>
module attributes {stable_mosaic.version = 11 : i64} {
  func.func @_ce_kernel(%arg0: i32, %arg1: memref<8x32xf32, #tpu.memory_space<vmem>>, %arg2: memref<8x1xi32, #tpu.memory_space<vmem>>, %arg3: memref<1x128xf32, #tpu.memory_space<vmem>>) attributes {dimension_semantics = [#tpu.dimension_semantics<parallel>], iteration_bounds = array<i64: 1>, scalar_prefetch = 0 : i64, scratch_operands = 0 : i64, tpu.core_type = #tpu.core_type<tc>, window_params = [{transform_indices = @transform_0, window_bounds = array<i64: 8, 32>}, {transform_indices = @transform_1, window_bounds = array<i64: 8, 1>}, {transform_indices = @transform_2, window_bounds = array<i64: 1, 128>}]} {
    %c0 = arith.constant 0 : index
    %c0_0 = arith.constant 0 : index
    %0 = vector.load %arg1[%c0, %c0_0] : memref<8x32xf32, #tpu.memory_space<vmem>>, vector<8x32xf32>
    %c0_1 = arith.constant 0 : index
    %c0_2 = arith.constant 0 : index
    %1 = vector.load %arg2[%c0_1, %c0_2] : memref<8x1xi32, #tpu.memory_space<vmem>>, vector<8x1xi32>
    %cst = arith.constant dense<0xFF800000> : vector<8xf32>
    %2 = vector.multi_reduction <maximumf>, %0, %cst [1] : vector<8x32xf32> to vector<8xf32>
    %3 = vector.shape_cast %2 : vector<8xf32> to vector<8x1xf32>
    %4 = vector.broadcast %3 : vector<8x1xf32> to vector<8x32xf32>
    %5 = arith.subf %0, %4 : vector<8x32xf32>
    %6 = math.exp %5 : vector<8x32xf32>
    %cst_3 = arith.constant dense<0.000000e+00> : vector<8xf32>
    %7 = vector.multi_reduction <add>, %6, %cst_3 [1] : vector<8x32xf32> to vector<8xf32>
    %8 = vector.shape_cast %7 : vector<8xf32> to vector<8x1xf32>
    %9 = tpu.iota {dimensions = array<i32: 1>} : vector<8x32xi32>
    %10 = vector.broadcast %1 : vector<8x1xi32> to vector<8x32xi32>
    %11 = arith.cmpi eq, %9, %10 : vector<8x32xi32>
    %cst_4 = arith.constant 0.000000e+00 : f32
    %12 = vector.broadcast %cst_4 : f32 to vector<8x32xf32>
    %13 = arith.select %11, %5, %12 : vector<8x32xi1>, vector<8x32xf32>
    %cst_5 = arith.constant dense<0.000000e+00> : vector<8xf32>
    %14 = vector.multi_reduction <add>, %13, %cst_5 [1] : vector<8x32xf32> to vector<8xf32>
    %15 = vector.shape_cast %14 : vector<8xf32> to vector<8x1xf32>
    %16 = math.log %8 : vector<8x1xf32>
    %17 = arith.subf %16, %15 : vector<8x1xf32>
    %c8_i32 = arith.constant 8 : i32
    %18 = arith.muli %arg0, %c8_i32 : i32
    %19 = tpu.iota {dimensions = array<i32: 0>} : vector<8x1xi32>
    %20 = vector.broadcast %18 : i32 to vector<8x1xi32>
    %21 = arith.addi %20, %19 : vector<8x1xi32>
    %c8_i32_6 = arith.constant 8 : i32
    %22 = vector.broadcast %c8_i32_6 : i32 to vector<8x1xi32>
    %23 = arith.cmpi slt, %21, %22 : vector<8x1xi32>
    %cst_7 = arith.constant 0.000000e+00 : f32
    %24 = vector.broadcast %cst_7 : f32 to vector<8x1xf32>
    %25 = arith.select %23, %17, %24 : vector<8x1xi1>, vector<8x1xf32>
    %26 = vector.shape_cast %25 : vector<8x1xf32> to vector<1x8x1xf32>
    %cst_8 = arith.constant dense<0.000000e+00> : vector<1xf32>
    %27 = vector.multi_reduction <add>, %26, %cst_8 [1, 2] : vector<1x8x1xf32> to vector<1xf32>
    %28 = vector.shape_cast %27 : vector<1xf32> to vector<1x1x1xf32>
    %29 = vector.extract %28[0, 0, 0] : f32 from vector<1x1x1xf32>
    %30 = vector.broadcast %29 : f32 to vector<1x128xf32>
    %c0_9 = arith.constant 0 : index
    %c0_10 = arith.constant 0 : index
    %31 = vector.load %arg3[%c0_9, %c0_10] : memref<1x128xf32, #tpu.memory_space<vmem>>, vector<1x128xf32>
    tpu.vector_store %arg3[%c0_9, %c0_10], %30 {strides = array<i32>} : memref<1x128xf32, #tpu.memory_space<vmem>>, vector<1x128xf32>,
    return
  }
  func.func @transform_0(%arg0: i32) -> (i32, i32) {
    %c0_i32 = arith.constant 0 : i32
    %c0_i32_0 = arith.constant 0 : i32
    return %arg0, %c0_i32 : i32, i32
  }
  func.func @transform_1(%arg0: i32) -> (i32, i32) {
    %c0_i32 = arith.constant 0 : i32
    %c0_i32_0 = arith.constant 0 : i32
    return %arg0, %c0_i32 : i32, i32
  }
  func.func @transform_2(%arg0: i32) -> (i32, i32) {
    %c0_i32 = arith.constant 0 : i32
    %c0_i32_0 = arith.constant 0 : i32
    return %c0_i32, %arg0 : i32, i32
  }
}

</mosaic_0001>

<bundles_post_ra>
// kernel: tpu_custom_call.1
= control target key start
LH: loop header
LB: loop body
LE: loop exit
PB: predicated region body
PF: predicated region fallthrough
CT: control target
= control target key end

     0   :  { %vm14_vm0 = vcmask 261120   ;;  %s131_s0 = inlined_call_operand.vmem [shape: f32[8,32], index: 0, kind: input, shape index: {}]   ;;  %s132_s1 = inlined_call_operand.vmem [shape: s32[8,1], index: 1, kind: input, shape index: {}]   ;;  %s133_s2 = inlined_call_operand.hbm [shape: f32[1,128], index: 2, kind: output, shape index: {}]  }
   0x1   :  { %v12_v0 = vld [vmem:[%s131_s0] sm:$0xff] }
   0x2   :  { %7 = vsyncpa [#allocation3], 0  ;;  %v15_v1 = vsel %vm14_vm0, %v12_v0, -inf  ;;  %v102_v2 = vmov 0   ;;  %v13_v3 = vld [vmem:[%s132_s1] sm:$0xff]  ;;  %v24_v7 = vlaneseq  ;;  %vm44_vm2 = vcmask 7168  }
   0x3   :  { %75 = vset.pattern.permute.xlu0 %v102_v2  ;;  %s103_s0 = smov [#allocation2]  }
   0x4   :  { %16 = vmax.xlane.f32.xlu0 %v15_v1  ;;  %v25_v8 = vand.u32 127, %v24_v7  ;;  %s63_s1 = sshll.u32 %s103_s0, 4  ;;  %s64_s1 = int_to_ptr.vmem [resolvable:$true] %s63_s1 }
   0x5   :  { %s80_s14 = scalar_lea.vmem %s64_s1, 16  ;;  %s84_s15 = scalar_lea.vmem %s64_s1, 32 }
   0x6   :  { %p81_p0 = scmp.ne.s32.totalorder %s64_s1, %s80_s14  ;;  %p85_p1 = scmp.lt.s32.totalorder %s64_s1, %s64_s1 }
   0x7   :  { %p86_p2 = scmp.lt.s32.totalorder %s84_s15, %s80_s14 }
   0x9   :  { %p87_p3 = por %p86_p2, %p85_p1 }
   0xb   :  { %p88_p4 = pnand %p87_p3, %p81_p0 }
  0x1a   :  { %27 = vperm.xlu0 %75, %v13_v3  }
  0x8d   :  { %v17_v4 = vpop.xlane.xlu0 %16 }
  0x8e   :  { %v18_v5 = vsub.f32 %v12_v0, %v17_v4 }
  0x90   :  { %v19_v6 = vmul.f32 1.442695, %v18_v5 }
  0x92   :  { %76 = vpow2.f32 %v19_v6 }
  0x95   :  { %v28_v9 = vpop.permute.xlu0 %27 }
  0x96   :  { %vm29_vm1 = vcmp.eq.s32.totalorder %v25_v8, %v28_v9 }
  0x97   :  { %v30_v12 = vsel %vm29_vm1, %v18_v5, 0.0 }
  0x98   :  { %v31_v13 = vsel %vm14_vm0, %v30_v12, 0.0 }
  0x9f   :  { %v77_v10 = vpop.eup %76 }
  0xa0   :  { %v21_v11 = vsel %vm14_vm0, %v77_v10, 0.0 }
  0xa1   :  { %22 = vadd.xlane.f32.xlu1 %v21_v11 }
  0xa5   :  { %32 = vadd.xlane.f32.xlu1 %v31_v13 }
 0x12a   :  { %v23_v14 = vpop.xlane.xlu1 %22 }
 0x12b   :  { %78 = vlog2.f32 %v23_v14 }
 0x12e   :  { %v33_v17 = vpop.xlane.xlu1 %32 }
 0x138   :  { %v79_v15 = vpop.eup %78 }
 0x139   :  { %v35_v16 = vmul.f32 0.6931472, %v79_v15 }
 0x13b   :  { %v36_v18 = vsub.f32 %v35_v16, %v33_v17 }
 0x13d   :  { %v45_v19 = vsel %vm44_vm2, %v36_v18, 0.0 }
 0x13e   :  { %46 = vadd.xlane.f32.xlu1 %v45_v19 }
 0x1c7   :  { %v47_v20 = vpop.xlane.xlu1 %46 }
 0x1c8   :  { %v48_v21 = vrot.slane %v47_v20, 4 }
 0x1ca   :  { %v49_v22 = vadd.f32 %v48_v21, %v47_v20 }
 0x1cc   :  { %v50_v23 = vrot.slane %v49_v22, 2 }
 0x1ce   :  { %v51_v24 = vadd.f32 %v50_v23, %v49_v22 }
 0x1d0   :  { %v52_v25 = vrot.slane %v51_v24, 1 }
 0x1d2   :  { %v53_v26 = vadd.f32 %v52_v25, %v51_v24 }
 0x1d4   :  { %71 = vpush %v53_v26 }
 0x205   :  { %s72_s13 = spop %71 }
 0x206   :  { %v55_v27 = vstv %s72_s13 }
 0x207   :  { %56 = vst [vmem:[#allocation2] sm:$0x1] %v55_v27 }
 0x208   :  { %91 = shalt.err (!%p88_p4)
}
 0x209   :  { %66 = dma.vmem_to_hbm [thread:$0]  %s64_s1, 16, %s133_s2, [#allocation3]  }
 0x20a   :  { %100 = dma.done.wait [#allocation3], 16  }
 0x20b   :  { %101 = vsyncadd [#allocation3], 4294967280 }
 0x20c   :  { %70 = vsyncpa [#allocation3], 1 }

</bundles_post_ra>
